<compile_context>
chip_gen: v6e
topology: v6e:2x2x1
jax: 0.10.0
libtpu: 0.0.40
codegen_flags: <defaults>
</compile_context>

<pallas_src>
import functools

import jax
import jax.numpy as jnp
from jax.experimental import pallas as pl
from jax.experimental.pallas import tpu as pltpu

NUM_STAGES = 2          # operation_count
NUM_OPS = 4             # len(operation_dict)
TEMPERATURE = 0.05
LANES = 128
ROW_ALIGN = 16          # multiple of 16 rows works for both f32 (8,128) and bf16 (16,128) tiles
NUM_COEFS = 7           # a_lo, a_hi, b_lo, b_hi, thr_sol, c_bri, shift_bri per stage
OPS_PER_ELEM_PER_STAGE = 11


def _round_up(x: int, m: int) -> int:
    return ((x + m - 1) // m) * m


def _apply_aug(k: int, x, m):
    """Synthetic differentiable augmentation ops (element-wise, image in [0,1])."""
    if k == 0:    # identity
        return x
    if k == 1:    # invert
        return 1.0 - x
    if k == 2:    # solarize with threshold = magnitude
        return jnp.where(x < m, x, 1.0 - x)
    if k == 3:    # brightness shift by (m - 0.5), clipped to [0, 1]
        return jnp.clip(x + (m - 0.5), 0.0, 1.0)
    raise ValueError(k)


def _fold_stage_coefficients(raw_weights, probs, mags):
    """Fold softmax(weights/T), probs, mags into 7 per-stage scalars.

    sum_k w_k * (p_k * aug_k(x) + (1 - p_k) * x)
      = A*x + B + c_sol*where(x < thr, x, 1-x) + c_bri*clip(x + shift, 0, 1)
      = where(x < thr, (A+c_sol)*x + B, (A-c_sol)*x + (B+c_sol))
        + c_bri*clip(x + shift, 0, 1)
    """
    w = jax.nn.softmax(raw_weights / TEMPERATURE, axis=-1)          # (S, K)
    a = (w[:, 0]
         + w[:, 1] * (1.0 - 2.0 * probs[:, 1])
         + w[:, 2] * (1.0 - probs[:, 2])
         + w[:, 3] * (1.0 - probs[:, 3]))
    b = w[:, 1] * probs[:, 1]
    c_sol = w[:, 2] * probs[:, 2]
    thr_sol = mags[:, 2]
    c_bri = w[:, 3] * probs[:, 3]
    shift_bri = mags[:, 3] - 0.5
    a_lo = a + c_sol
    a_hi = a - c_sol
    b_lo = b
    b_hi = b + c_sol
    return jnp.stack([a_lo, a_hi, b_lo, b_hi, thr_sol, c_bri, shift_bri],
                     axis=-1).astype(jnp.float32)                   # (S, 7)


def subpolicy_kernel(coef_ref, x_ref, o_ref):
    """coef: (NUM_STAGES, 7) in SMEM; x/o: (block_rows, 128) VMEM tiles."""
    x = x_ref[...].astype(jnp.float32)
    for s in range(NUM_STAGES):          # stages are sequential (output feeds next stage)
        a_lo = coef_ref[s, 0]
        a_hi = coef_ref[s, 1]
        b_lo = coef_ref[s, 2]
        b_hi = coef_ref[s, 3]
        thr = coef_ref[s, 4]
        c_bri = coef_ref[s, 5]
        shift = coef_ref[s, 6]
        # identity + invert + solarize folded into one select between affines
        base = jnp.where(x < thr, a_lo * x + b_lo, a_hi * x + b_hi)
        # brightness term: one add, one max, one min, one mul, one add
        bri = jnp.clip(x + shift, 0.0, 1.0)
        x = base + c_bri * bri
    o_ref[...] = x.astype(o_ref.dtype)


@functools.lru_cache(maxsize=1)
def _device_config():
    """(max_block_rows, vmem_limit_bytes, dimension_semantics) per TPU generation."""
    try:
        kind = jax.devices()[0].device_kind.lower()
    except Exception:
        kind = ""
    if "v5" in kind:
        # 16 MiB default scoped-VMEM: 2 MiB blocks, 8 MiB pipelined in+out.
        return 4096, None, ("parallel",)
    if "v7" in kind:
        # 2 TensorCores: actually shard the grid across cores.
        return 8192, 48 * 1024 * 1024, (pltpu.CORE_PARALLEL,)
    # v6e (and default): 4 MiB blocks, 16 MiB pipelined, explicit headroom.
    return 8192, 48 * 1024 * 1024, ("parallel",)


@jax.jit
def subpolicy_forward(x_nchw, raw_weights, probs, mags):
    """x_nchw: (N, C, H, W) float32/bfloat16 in [0, 1].  Returns same shape/dtype."""
    n, c, h, w = x_nchw.shape
    total = n * c * h * w
    dtype = x_nchw.dtype

    max_block_rows, vmem_limit, dim_sem = _device_config()

    # Lane-dense layout: flatten to (rows, 128); pad rows only to a 16-multiple
    # (tiny, and zero for 2048-divisible sizes) and let the grid handle the
    # ragged last block instead of padding to a block multiple.
    rows = pl.cdiv(total, LANES)
    padded_rows = _round_up(rows, ROW_ALIGN)
    padded_total = padded_rows * LANES
    needs_pad = padded_total != total

    block_rows = min(max_block_rows, padded_rows)
    grid = (pl.cdiv(padded_rows, block_rows),)

    x_flat = x_nchw.reshape(-1)
    if needs_pad:
        # TODO(synk): could fuse this pad into the pallas_call operand via
        # allow_input_fusion to drop the extra HBM pass for odd sizes.
        x_flat = jnp.pad(x_flat, (0, padded_total - total))
    x2d = x_flat.reshape(padded_rows, LANES)

    coef = _fold_stage_coefficients(raw_weights, probs, mags)        # (S, 7) -> SMEM

    itemsize = jnp.dtype(dtype).itemsize
    cost = pl.CostEstimate(
        flops=OPS_PER_ELEM_PER_STAGE * NUM_STAGES * total,
        transcendentals=0,
        bytes_accessed=2 * itemsize * total,                         # real (unpadded) traffic
    )

    out2d = pl.pallas_call(
        subpolicy_kernel,
        out_shape=jax.ShapeDtypeStruct((padded_rows, LANES), dtype),
        grid_spec=pltpu.PrefetchScalarGridSpec(
            num_scalar_prefetch=0,
            grid=grid,
            in_specs=[
                pl.BlockSpec(memory_space=pltpu.MemorySpace.SMEM),      # folded coefficients
                pl.BlockSpec((block_rows, LANES), lambda i: (i, 0)),    # x tile
            ],
            out_specs=pl.BlockSpec((block_rows, LANES), lambda i: (i, 0)),
        ),
        compiler_params=pltpu.CompilerParams(
            dimension_semantics=dim_sem,
            vmem_limit_bytes=vmem_limit,
        ),
        cost_estimate=cost,
        # Only alias when the operand is already a fresh padded temp; aliasing a
        # non-donated entry parameter would force XLA to insert a defensive copy.
        input_output_aliases=({1: 0} if needs_pad else {}),
    )(coef, x2d)

    out_flat = out2d.reshape(-1)
    if needs_pad:
        out_flat = out_flat[:total]
    return out_flat.reshape(n, c, h, w)


def subpolicy_reference(x_nchw, raw_weights, probs, mags):
    """Pure-JAX reference of the original (unfolded) semantics."""
    stage_weights = jax.nn.softmax(raw_weights / TEMPERATURE, axis=-1)
    x = x_nchw.astype(jnp.float32)
    for s in range(NUM_STAGES):
        acc = jnp.zeros_like(x)
        for k in range(NUM_OPS):
            w = stage_weights[s, k]
            p = probs[s, k]
            m = mags[s, k]
            aug = _apply_aug(k, x, m)
            acc = acc + w * (p * aug + (1.0 - p) * x)
        x = acc
    return x


if __name__ == "__main__":
    key = jax.random.PRNGKey(0)
    k_x, k_w, k_p, k_m, k_x2 = jax.random.split(key, 5)

    # Deterministic parameter init (uniform(0,1), as in init_parameters).
    raw_weights = jax.random.uniform(k_w, (NUM_STAGES, NUM_OPS), dtype=jnp.float32)
    probs = jax.random.uniform(k_p, (NUM_STAGES, NUM_OPS), dtype=jnp.float32)
    mags = jax.random.uniform(k_m, (NUM_STAGES, NUM_OPS), dtype=jnp.float32)

    # Small NCHW input consistent with an image-augmentation policy.
    N, C, H, W = 2, 4, 16, 16
    x = jax.random.uniform(k_x, (N, C, H, W), dtype=jnp.float32)

    out = jax.block_until_ready(subpolicy_forward(x, raw_weights, probs, mags))
    ref = subpolicy_reference(x, raw_weights, probs, mags)
    assert out.shape == x.shape and out.dtype == x.dtype
    assert jnp.allclose(out, ref, atol=1e-5, rtol=1e-5), "mismatch vs reference"

    # Odd-sized input: exercises the minimal-pad + ragged-last-block + alias path.
    x_odd = jax.random.uniform(k_x2, (2, 3, 15, 17), dtype=jnp.float32)
    out_odd = jax.block_until_ready(subpolicy_forward(x_odd, raw_weights, probs, mags))
    ref_odd = subpolicy_reference(x_odd, raw_weights, probs, mags)
    assert out_odd.shape == x_odd.shape
    assert jnp.allclose(out_odd, ref_odd, atol=1e-5, rtol=1e-5), "mismatch vs reference (odd)"

    # bf16 I/O path (halves HBM traffic on mem-bound v5e/v6e); compute stays f32.
    x_bf16 = x.astype(jnp.bfloat16)
    out_bf16 = jax.block_until_ready(subpolicy_forward(x_bf16, raw_weights, probs, mags))
    ref_bf16 = subpolicy_reference(x_bf16.astype(jnp.float32), raw_weights, probs, mags)
    assert out_bf16.shape == x.shape and out_bf16.dtype == jnp.bfloat16
    assert jnp.allclose(out_bf16.astype(jnp.float32), ref_bf16, atol=2e-2), "mismatch vs reference (bf16)"

    # TODO(synk): eval-mode path (Categorical sampling of a single op per stage)
    # and any stochastic gating are host-side random-control-flow decisions; only
    # the deterministic training-mode expectation is implemented in-kernel.
    print("KERNEL_OK")
</pallas_src>

<mosaic_0001>
module attributes {stable_mosaic.version = 11 : i64} {
  func.func @subpolicy_kernel(%arg0: i32, %arg1: memref<2x7xf32, #tpu.memory_space<smem>>, %arg2: memref<16x128xf32, #tpu.memory_space<vmem>>, %arg3: memref<16x128xf32, #tpu.memory_space<vmem>>) attributes {dimension_semantics = [#tpu.dimension_semantics<parallel>], iteration_bounds = array<i64: 1>, scalar_prefetch = 0 : i64, scratch_operands = 0 : i64, tpu.core_type = #tpu.core_type<tc>, window_params = [{transform_indices = @transform_0, window_bounds = array<i64: 2, 7>}, {transform_indices = @transform_1, window_bounds = array<i64: 16, 128>}, {transform_indices = @transform_2, window_bounds = array<i64: 16, 128>}]} {
    %c0 = arith.constant 0 : index
    %c0_0 = arith.constant 0 : index
    %0 = vector.load %arg2[%c0, %c0_0] : memref<16x128xf32, #tpu.memory_space<vmem>>, vector<16x128xf32>
    %c0_1 = arith.constant 0 : index
    %c0_2 = arith.constant 0 : index
    %1 = memref.load %arg1[%c0_1, %c0_2] : memref<2x7xf32, #tpu.memory_space<smem>>
    %c0_3 = arith.constant 0 : index
    %c1 = arith.constant 1 : index
    %2 = memref.load %arg1[%c0_3, %c1] : memref<2x7xf32, #tpu.memory_space<smem>>
    %c0_4 = arith.constant 0 : index
    %c2 = arith.constant 2 : index
    %3 = memref.load %arg1[%c0_4, %c2] : memref<2x7xf32, #tpu.memory_space<smem>>
    %c0_5 = arith.constant 0 : index
    %c3 = arith.constant 3 : index
    %4 = memref.load %arg1[%c0_5, %c3] : memref<2x7xf32, #tpu.memory_space<smem>>
    %c0_6 = arith.constant 0 : index
    %c4 = arith.constant 4 : index
    %5 = memref.load %arg1[%c0_6, %c4] : memref<2x7xf32, #tpu.memory_space<smem>>
    %c0_7 = arith.constant 0 : index
    %c5 = arith.constant 5 : index
    %6 = memref.load %arg1[%c0_7, %c5] : memref<2x7xf32, #tpu.memory_space<smem>>
    %c0_8 = arith.constant 0 : index
    %c6 = arith.constant 6 : index
    %7 = memref.load %arg1[%c0_8, %c6] : memref<2x7xf32, #tpu.memory_space<smem>>
    %8 = vector.broadcast %5 : f32 to vector<16x128xf32>
    %9 = arith.cmpf olt, %0, %8 : vector<16x128xf32>
    %10 = vector.broadcast %1 : f32 to vector<16x128xf32>
    %11 = arith.mulf %10, %0 : vector<16x128xf32>
    %12 = vector.broadcast %3 : f32 to vector<16x128xf32>
    %13 = arith.addf %11, %12 : vector<16x128xf32>
    %14 = vector.broadcast %2 : f32 to vector<16x128xf32>
    %15 = arith.mulf %14, %0 : vector<16x128xf32>
    %16 = vector.broadcast %4 : f32 to vector<16x128xf32>
    %17 = arith.addf %15, %16 : vector<16x128xf32>
    %18 = arith.select %9, %13, %17 : vector<16x128xi1>, vector<16x128xf32>
    %19 = vector.broadcast %7 : f32 to vector<16x128xf32>
    %20 = arith.addf %0, %19 : vector<16x128xf32>
    %cst = arith.constant 0.000000e+00 : f32
    %cst_9 = arith.constant 1.000000e+00 : f32
    %21 = vector.broadcast %cst : f32 to vector<16x128xf32>
    %22 = arith.maximumf %21, %20 : vector<16x128xf32>
    %23 = vector.broadcast %cst_9 : f32 to vector<16x128xf32>
    %24 = arith.minimumf %23, %22 : vector<16x128xf32>
    %25 = vector.broadcast %6 : f32 to vector<16x128xf32>
    %26 = arith.mulf %25, %24 : vector<16x128xf32>
    %27 = arith.addf %18, %26 : vector<16x128xf32>
    %c1_10 = arith.constant 1 : index
    %c0_11 = arith.constant 0 : index
    %28 = memref.load %arg1[%c1_10, %c0_11] : memref<2x7xf32, #tpu.memory_space<smem>>
    %c1_12 = arith.constant 1 : index
    %c1_13 = arith.constant 1 : index
    %29 = memref.load %arg1[%c1_12, %c1_13] : memref<2x7xf32, #tpu.memory_space<smem>>
    %c1_14 = arith.constant 1 : index
    %c2_15 = arith.constant 2 : index
    %30 = memref.load %arg1[%c1_14, %c2_15] : memref<2x7xf32, #tpu.memory_space<smem>>
    %c1_16 = arith.constant 1 : index
    %c3_17 = arith.constant 3 : index
    %31 = memref.load %arg1[%c1_16, %c3_17] : memref<2x7xf32, #tpu.memory_space<smem>>
    %c1_18 = arith.constant 1 : index
    %c4_19 = arith.constant 4 : index
    %32 = memref.load %arg1[%c1_18, %c4_19] : memref<2x7xf32, #tpu.memory_space<smem>>
    %c1_20 = arith.constant 1 : index
    %c5_21 = arith.constant 5 : index
    %33 = memref.load %arg1[%c1_20, %c5_21] : memref<2x7xf32, #tpu.memory_space<smem>>
    %c1_22 = arith.constant 1 : index
    %c6_23 = arith.constant 6 : index
    %34 = memref.load %arg1[%c1_22, %c6_23] : memref<2x7xf32, #tpu.memory_space<smem>>
    %35 = vector.broadcast %32 : f32 to vector<16x128xf32>
    %36 = arith.cmpf olt, %27, %35 : vector<16x128xf32>
    %37 = vector.broadcast %28 : f32 to vector<16x128xf32>
    %38 = arith.mulf %37, %27 : vector<16x128xf32>
    %39 = vector.broadcast %30 : f32 to vector<16x128xf32>
    %40 = arith.addf %38, %39 : vector<16x128xf32>
    %41 = vector.broadcast %29 : f32 to vector<16x128xf32>
    %42 = arith.mulf %41, %27 : vector<16x128xf32>
    %43 = vector.broadcast %31 : f32 to vector<16x128xf32>
    %44 = arith.addf %42, %43 : vector<16x128xf32>
    %45 = arith.select %36, %40, %44 : vector<16x128xi1>, vector<16x128xf32>
    %46 = vector.broadcast %34 : f32 to vector<16x128xf32>
    %47 = arith.addf %27, %46 : vector<16x128xf32>
    %cst_24 = arith.constant 0.000000e+00 : f32
    %cst_25 = arith.constant 1.000000e+00 : f32
    %48 = vector.broadcast %cst_24 : f32 to vector<16x128xf32>
    %49 = arith.maximumf %48, %47 : vector<16x128xf32>
    %50 = vector.broadcast %cst_25 : f32 to vector<16x128xf32>
    %51 = arith.minimumf %50, %49 : vector<16x128xf32>
    %52 = vector.broadcast %33 : f32 to vector<16x128xf32>
    %53 = arith.mulf %52, %51 : vector<16x128xf32>
    %54 = arith.addf %45, %53 : vector<16x128xf32>
    %c0_26 = arith.constant 0 : index
    %c0_27 = arith.constant 0 : index
    %55 = vector.load %arg3[%c0_26, %c0_27] : memref<16x128xf32, #tpu.memory_space<vmem>>, vector<16x128xf32>
    tpu.vector_store %arg3[%c0_26, %c0_27], %54 {strides = array<i32>} : memref<16x128xf32, #tpu.memory_space<vmem>>, vector<16x128xf32>,
    return
  }
  func.func @transform_0(%arg0: i32) -> (i32, i32) {
    %c0_i32 = arith.constant 0 : i32
    %c0_i32_0 = arith.constant 0 : i32
    %c0_i32_1 = arith.constant 0 : i32
    return %c0_i32, %c0_i32_0 : i32, i32
  }
  func.func @transform_1(%arg0: i32) -> (i32, i32) {
    %c0_i32 = arith.constant 0 : i32
    %c0_i32_0 = arith.constant 0 : i32
    return %arg0, %c0_i32 : i32, i32
  }
  func.func @transform_2(%arg0: i32) -> (i32, i32) {
    %c0_i32 = arith.constant 0 : i32
    %c0_i32_0 = arith.constant 0 : i32
    return %arg0, %c0_i32 : i32, i32
  }
}

</mosaic_0001>

<bundles_post_ra>
// kernel: subpolicy_forward.1
= control target key start
LH: loop header
LB: loop body
LE: loop exit
PB: predicated region body
PF: predicated region fallthrough
CT: control target
= control target key end

     0   :  { %7 = vsyncpa [#allocation3], 0  ;;  %s188_s0 = inlined_call_operand.vmem [shape: f32[2,7], index: 0, kind: input, shape index: {}]   ;;  %s189_s1 = inlined_call_operand.vmem [shape: f32[16,128], index: 1, kind: input, shape index: {}]   ;;  %s190_s2 = inlined_call_operand.vmem [shape: f32[16,128], index: 2, kind: output, shape index: {}]  }
   0x1   :  { %s14_s11 = sshll.u32 %s188_s0, 4  ;;  %s15_s11 = int_to_ptr.vmem [resolvable:$true] %s14_s11 }
   0x2   :  { %s119_s12 = scalar_lea.vmem %s15_s11, 32  ;;  %p124_p1 = scmp.lt.s32.totalorder %s15_s11, %s15_s11 }
   0x3   :  { %p120_p0 = scmp.ne.s32.totalorder %s15_s11, %s119_s12  ;;  %p125_p2 = scmp.lt.s32.totalorder %s119_s12, %s119_s12 }
   0x5   :  { %p126_p3 = por %p125_p2, %p124_p1 }
   0x7   :  { %p127_p4 = pnand %p126_p3, %p120_p0 }
   0x9   :  { %130 = shalt.err (!%p127_p4)
}
   0xa   :  { %s133_s13 = smov [#allocation2]  }
   0xb   :  { %17 = dma.vmem_to_smem %s15_s11, 32, %s133_s13, [#allocation3]  }
   0xc   :  { %131 = dma.done.wait [#allocation3], 32  }
   0xd   :  { %132 = vsyncadd [#allocation3], 4294967264 }
   0xe   :  { %23 = sfence }
   0xf   :  { %s26_s14 = sld [smem:[#allocation2]]  ;;  %v24_v2 = vld [vmem:[%s189_s1] sm:$0xff]  ;;  %v25_v3 = vld [vmem:[%s189_s1 + $0x8] sm:$0xff] }
  0x10   :  { %s105_s15 = sld [smem:[#allocation2 + $0x1]] }
  0x11   :  { %s106_s16 = sld [smem:[#allocation2 + $0x2]] }
  0x12   :  { %s107_s17 = sld [smem:[#allocation2 + $0x3]] }
  0x13   :  { %s108_s18 = sld [smem:[#allocation2 + $0x4]] }
  0x14   :  { %s110_s19 = sld [smem:[#allocation2 + $0x6]] }
  0x15   :  { %v36_v0 = vstv %s26_s14  ;;  %s152_s0 = sld [smem:[#allocation2 + $0x5]] }
  0x16   :  { %v42_v1 = vstv %s105_s15  ;;  %s157_s22 = sld [smem:[#allocation2 + $0x80]]  ;;  %v37_v4 = vmul.f32 %v36_v0, %v24_v2  ;;  %v38_v6 = vmul.f32 %v36_v0, %v25_v3 }
  0x17   :  { %v43_v5 = vmul.f32 %v42_v1, %v24_v2  ;;  %s162_s25 = sld [smem:[#allocation2 + $0x81]]  ;;  %v44_v7 = vmul.f32 %v42_v1, %v25_v3  ;;  %v39_v8 = vstv %s106_s16 }
  0x18   :  { %v45_v9 = vstv %s107_s17  ;;  %s164_s26 = sld [smem:[#allocation2 + $0x82]]  ;;  %v40_v14 = vadd.f32 %v39_v8, %v37_v4  ;;  %v41_v16 = vadd.f32 %v39_v8, %v38_v6 }
  0x19   :  { %v33_v10 = vstv %s108_s18  ;;  %s166_s27 = sld [smem:[#allocation2 + $0x83]]  ;;  %v46_v15 = vadd.f32 %v45_v9, %v43_v5  ;;  %v47_v17 = vadd.f32 %v45_v9, %v44_v7 }
  0x1a   :  { %v50_v11 = vstv %s110_s19  ;;  %s168_s28 = sld [smem:[#allocation2 + $0x86]]  ;;  %vm34_vm0 = vcmp.lt.f32.partialorder %v24_v2, %v33_v10  ;;  %vm35_vm1 = vcmp.lt.f32.partialorder %v25_v3, %v33_v10 }
  0x1b   :  { %v51_v12 = vadd.f32 %v50_v11, %v24_v2  ;;  %v52_v13 = vadd.f32 %v50_v11, %v25_v3  ;;  %s170_s1 = sld [smem:[#allocation2 + $0x84]]  ;;  %v57_v20 = vstv %s152_s0  ;;  %v48_v23 = vsel %vm34_vm0, %v40_v14, %v46_v15 }
  0x1c   :  { %s173_s29 = sld [smem:[#allocation2 + $0x85]]  ;;  %v49_v24 = vsel %vm35_vm1, %v41_v16, %v47_v17  ;;  %v72_v27 = vstv %s157_s22 }
  0x1d   :  { %v53_v18 = vmax.f32 %v51_v12, 0.0  ;;  %v54_v19 = vmax.f32 %v52_v13, 0.0  ;;  %v78_v28 = vstv %s162_s25 }
  0x1e   :  { %v75_v33 = vstv %s164_s26 }
  0x1f   :  { %v55_v21 = vmin.f32 %v53_v18, 1.0  ;;  %v56_v22 = vmin.f32 %v54_v19, 1.0  ;;  %v81_v34 = vstv %s166_s27 }
  0x20   :  { %v86_v29 = vstv %s168_s28 }
  0x21   :  { %v58_v25 = vmul.f32 %v57_v20, %v55_v21  ;;  %v59_v26 = vmul.f32 %v57_v20, %v56_v22  ;;  %v69_v32 = vstv %s170_s1 }
  0x22   :  { %v93_v38 = vstv %s173_s29 }
  0x23   :  { %v60_v30 = vadd.f32 %v58_v25, %v48_v23  ;;  %v61_v31 = vadd.f32 %v59_v26, %v49_v24 }
  0x25   :  { %v73_v35 = vmul.f32 %v72_v27, %v60_v30  ;;  %v79_v36 = vmul.f32 %v78_v28, %v60_v30  ;;  %v87_v37 = vadd.f32 %v86_v29, %v60_v30  ;;  %v74_v39 = vmul.f32 %v72_v27, %v61_v31 }
  0x26   :  { %v80_v40 = vmul.f32 %v78_v28, %v61_v31  ;;  %v88_v41 = vadd.f32 %v86_v29, %v61_v31  ;;  %vm70_vm2 = vcmp.lt.f32.partialorder %v60_v30, %v69_v32  ;;  %vm71_vm3 = vcmp.lt.f32.partialorder %v61_v31, %v69_v32 }
  0x27   :  { %v76_v42 = vadd.f32 %v75_v33, %v73_v35  ;;  %v82_v43 = vadd.f32 %v81_v34, %v79_v36  ;;  %v89_v44 = vmax.f32 %v87_v37, 0.0  ;;  %v77_v45 = vadd.f32 %v75_v33, %v74_v39 }
  0x28   :  { %v83_v46 = vadd.f32 %v81_v34, %v80_v40  ;;  %v90_v47 = vmax.f32 %v88_v41, 0.0 }
  0x29   :  { %v91_v48 = vmin.f32 %v89_v44, 1.0  ;;  %v84_v49 = vsel %vm70_vm2, %v76_v42, %v82_v43 }
  0x2a   :  { %v92_v50 = vmin.f32 %v90_v47, 1.0  ;;  %v85_v52 = vsel %vm71_vm3, %v77_v45, %v83_v46 }
  0x2b   :  { %v94_v51 = vmul.f32 %v93_v38, %v91_v48 }
  0x2c   :  { %v95_v53 = vmul.f32 %v93_v38, %v92_v50 }
  0x2d   :  { %v96_v54 = vadd.f32 %v94_v51, %v84_v49 }
  0x2e   :  { %v97_v55 = vadd.f32 %v95_v53, %v85_v52 }
  0x2f   :  { %98 = vst [vmem:[%s190_s2] sm:$0xff] %v96_v54 }
  0x30   :  { %99 = vst [vmem:[%s190_s2 + $0x8] sm:$0xff] %v97_v55 }
  0x31   :  { %104 = vsyncpa [#allocation3], 1 }

</bundles_post_ra>
